<compile_context>
chip_gen: v6e
topology: v6e:2x2x1
jax: 0.10.0
libtpu: 0.0.40
codegen_flags: <defaults>
</compile_context>

<pallas_src>
import math

import jax
import jax.numpy as jnp
import numpy as np
from jax.experimental import pallas as pl
from jax.experimental.pallas import tpu as pltpu


# ----------------------------------------------------------------------------
# Parameter initialization (deterministic, mirrors MelScale.bank + init_filters)
# ----------------------------------------------------------------------------
def mel_bank(channels: int, fs: float) -> jnp.ndarray:
    """Mel-scale filter start/stop frequencies, shape (channels, 2)."""
    def convert(f):
        return 1125.0 * jnp.log(f / 700.0 + 1.0)

    def invert(x):
        return 700.0 * (jnp.exp(x / 1125.0) - 1.0)

    min_frequency = jnp.float32(30.0)
    max_frequency = jnp.float32(fs * 0.5)
    freqs = jnp.linspace(convert(min_frequency), convert(max_frequency), channels + 2)
    freqs = invert(freqs)
    f1, f2 = freqs[:-2], freqs[2:]
    return jnp.stack([f1, f2], axis=1)


def init_sinc_params(out_channels: int, fs: float) -> jnp.ndarray:
    """self.f = MelScale.bank(out_channels, fs) / fs (the learnable parameter)."""
    return (mel_bank(out_channels, fs) / fs).astype(jnp.float32)


# ----------------------------------------------------------------------------
# Filter construction (mirrors SincConv._create_filters) — small glue math.
# ----------------------------------------------------------------------------
def create_sinc_filters(f: jnp.ndarray, kernel_size: int) -> jnp.ndarray:
    """Returns filters of shape (C_out, kernel_size), float32."""
    n = kernel_size // 2
    x = 2.0 * math.pi * jnp.linspace(1.0, float(n), n).astype(jnp.float32)
    lin = jnp.linspace(1.0, float(n), n).astype(jnp.float32)
    L = 2 * n + 1
    window = 0.54 - 0.46 * jnp.cos(2.0 * math.pi * lin[::-1] / L)   # hamming

    f_mins = jnp.abs(f[:, 0])
    f_maxs = jnp.abs(f[:, 0]) + jnp.abs(f[:, 1] - f[:, 0])

    f_mins_x = f_mins[:, None] * x[None, :]
    f_maxs_x = f_maxs[:, None] * x[None, :]
    kern = (jnp.sin(f_maxs_x) - jnp.sin(f_mins_x)) / (0.5 * x)
    kern = kern * window[None, :]

    kern_left = kern[:, ::-1]
    kern_center = (2.0 * f_maxs - 2.0 * f_mins)[:, None]
    filters = jnp.concatenate([kern_left, kern_center, kern], axis=1)
    return filters.astype(jnp.float32)


def _round_up(v: int, m: int) -> int:
    return ((v + m - 1) // m) * m


# ----------------------------------------------------------------------------
# Pallas kernel: grouped conv1d (groups == C_in) as per-group im2col MXU matmul
# ----------------------------------------------------------------------------
def _make_sinc_kernel(c_in, opg, ksize, t_tile, stride, dilation, compute_dtype):
    def kernel(xlo_ref, xhi_ref, f_ref, o_ref):
        # xlo_ref/xhi_ref: (1, c_in, t_tile*stride) current input block + next
        #                  block (provides the (K-1)*dilation halo, all static).
        # f_ref:           (c_out, K) sinc filters (resident across the grid).
        # o_ref:           (1, c_out, t_tile) output time tile.
        group_outs = []
        for g in range(c_in):                 # groups; c_in is small (1-2 typ.)
            win = jnp.concatenate([xlo_ref[0, g, :], xhi_ref[0, g, :]], axis=0)
            if stride == 1:
                taps = [win[k * dilation: k * dilation + t_tile]
                        for k in range(ksize)]
            else:
                # TODO(synk): stride>1 lane-strided slices may lower to XLU
                # gathers (untested in __main__); a polyphase time layout would
                # be the performant alternative.
                taps = [jax.lax.slice(win, (k * dilation,),
                                      (k * dilation + (t_tile - 1) * stride + 1,),
                                      (stride,))
                        for k in range(ksize)]
            # im2col slab (K, t_tile); the K-contraction runs on the MXU.
            # TODO(synk): for very large K (>~512 taps) chunk K with a
            # fori_loop / grid reduction axis to bound trace size.
            slab = jnp.stack(taps, axis=0).astype(compute_dtype)
            fg = f_ref[g * opg:(g + 1) * opg, :].astype(compute_dtype)  # (opg, K)
            group_outs.append(
                jnp.dot(fg, slab, preferred_element_type=jnp.float32,
                        precision=jax.lax.Precision.HIGHEST))           # (opg, t_tile)
        out = group_outs[0] if c_in == 1 else jnp.concatenate(group_outs, axis=0)
        # Single lane/sublane-dense store of the full (c_out, t_tile) tile.
        o_ref[0] = out.astype(o_ref.dtype)
    return kernel


def sinc_conv_forward(x, f_param, *, kernel_size, stride=1, padding=0,
                      dilation=1, t_tile_max=512, compute_dtype=jnp.float32):
    """Forward pass of SincConv.  x: (B, C_in, T_in) float32."""
    B, c_in, t_in = x.shape
    filters = create_sinc_filters(f_param, kernel_size)       # (C_out, K)
    c_out, K = filters.shape
    assert K == kernel_size and c_out % c_in == 0
    opg = c_out // c_in                                        # out-chans / group

    t_out = (t_in + 2 * padding - dilation * (K - 1) - 1) // stride + 1
    assert t_out > 0, "input too short for this kernel_size/stride/dilation"

    # Lane-dense output time tile: multiple of 128, capped at t_tile_max, but
    # big enough that (current block + next block) covers the dilation halo.
    halo = dilation * (K - 1)
    t_tile = min(_round_up(t_tile_max, 128), _round_up(t_out, 128))
    t_tile = max(t_tile, _round_up(-(-(halo + 1) // stride), 128))
    n_t = pl.cdiv(t_out, t_tile)
    t_out_pad = n_t * t_tile
    t_blk = t_tile * stride                                    # input elems / block

    # One wrapper-side pad: conv left padding + zeros on the right so that
    # (n_t + 1) input blocks exist (the halo block of the last tile is zeros).
    right = max(0, (n_t + 1) * t_blk - t_in - padding)
    x_pad = jnp.pad(x, ((0, 0), (0, 0), (padding, right)))

    kernel = _make_sinc_kernel(c_in, opg, K, t_tile, stride, dilation,
                               compute_dtype)

    out = pl.pallas_call(
        kernel,
        out_shape=jax.ShapeDtypeStruct((B, c_out, t_out_pad), x.dtype),
        grid_spec=pltpu.PrefetchScalarGridSpec(
            num_scalar_prefetch=0,
            grid=(B, n_t),
            in_specs=[
                # current time block
                pl.BlockSpec((1, c_in, t_blk), lambda b, t: (b, 0, t)),
                # next time block (provides the (K-1)*dilation halo)
                pl.BlockSpec((1, c_in, t_blk), lambda b, t: (b, 0, t + 1)),
                # filters, resident across the whole grid
                pl.BlockSpec((c_out, K), lambda b, t: (0, 0)),
            ],
            out_specs=pl.BlockSpec((1, c_out, t_tile), lambda b, t: (b, 0, t)),
        ),
        compiler_params=pltpu.CompilerParams(
            dimension_semantics=("parallel", "parallel")),
    )(x_pad, x_pad, filters)
    return out[:, :, :t_out]


# ----------------------------------------------------------------------------
# Reference (plain JAX) for verification
# ----------------------------------------------------------------------------
def sinc_conv_reference(x, f_param, *, kernel_size, stride=1, padding=0,
                        dilation=1, in_channels=None):
    filters = create_sinc_filters(f_param, kernel_size)        # (C_out, K)
    w = filters[:, None, :]                                    # (C_out, 1, K)
    return jax.lax.conv_general_dilated(
        x, w,
        window_strides=(stride,),
        padding=[(padding, padding)],
        rhs_dilation=(dilation,),
        dimension_numbers=("NCH", "OIH", "NCH"),
        feature_group_count=in_channels,
        precision=jax.lax.Precision.HIGHEST,
    )


if __name__ == "__main__":
    FS = 16000.0
    key = jax.random.PRNGKey(0)
    k1, k2 = jax.random.split(key)

    # --- Test 1: small config, single time tile, two groups -----------------
    B, C_IN, C_OUT, KSIZE, T_IN = 2, 2, 8, 9, 64
    x1 = jax.random.normal(k1, (B, C_IN, T_IN), dtype=jnp.float32)
    f1 = init_sinc_params(C_OUT, FS)                           # (C_OUT, 2)

    out1 = sinc_conv_forward(x1, f1, kernel_size=KSIZE, stride=1, padding=0,
                             dilation=1)
    out1 = jax.block_until_ready(out1)
    ref1 = sinc_conv_reference(x1, f1, kernel_size=KSIZE, stride=1, padding=0,
                               dilation=1, in_channels=C_IN)
    ref1 = jax.block_until_ready(ref1)
    assert out1.shape == (B, C_OUT, T_IN - (KSIZE - 1)), out1.shape
    np.testing.assert_allclose(np.asarray(out1), np.asarray(ref1),
                               rtol=1e-4, atol=1e-5)

    # --- Test 2: multiple time tiles + remainder + padding + dilation --------
    B2, C_IN2, C_OUT2, KSIZE2, T_IN2 = 1, 1, 16, 33, 800
    PAD2, DIL2 = 16, 2
    x2 = jax.random.normal(k2, (B2, C_IN2, T_IN2), dtype=jnp.float32)
    f2 = init_sinc_params(C_OUT2, FS)                          # (C_OUT2, 2)

    out2 = sinc_conv_forward(x2, f2, kernel_size=KSIZE2, stride=1,
                             padding=PAD2, dilation=DIL2, t_tile_max=256)
    out2 = jax.block_until_ready(out2)
    ref2 = sinc_conv_reference(x2, f2, kernel_size=KSIZE2, stride=1,
                               padding=PAD2, dilation=DIL2, in_channels=C_IN2)
    ref2 = jax.block_until_ready(ref2)
    t_out2 = (T_IN2 + 2 * PAD2 - DIL2 * (KSIZE2 - 1) - 1) // 1 + 1
    assert out2.shape == (B2, C_OUT2, t_out2), out2.shape
    np.testing.assert_allclose(np.asarray(out2), np.asarray(ref2),
                               rtol=1e-4, atol=1e-5)

    print("KERNEL_OK")
</pallas_src>

<mosaic_0001>
module attributes {stable_mosaic.version = 11 : i64} {
  func.func @kernel(%arg0: i32, %arg1: i32, %arg2: memref<1x2x128xf32, #tpu.memory_space<vmem>>, %arg3: memref<1x2x128xf32, #tpu.memory_space<vmem>>, %arg4: memref<8x9xf32, #tpu.memory_space<vmem>>, %arg5: memref<1x8x128xf32, #tpu.memory_space<vmem>>) attributes {dimension_semantics = [#tpu.dimension_semantics<parallel>, #tpu.dimension_semantics<parallel>], iteration_bounds = array<i64: 2, 1>, scalar_prefetch = 0 : i64, scratch_operands = 0 : i64, tpu.core_type = #tpu.core_type<tc>, window_params = [{transform_indices = @transform_0, window_bounds = array<i64: 1, 2, 128>}, {transform_indices = @transform_1, window_bounds = array<i64: 1, 2, 128>}, {pipeline_mode = #tpu.pipeline_mode<synchronous>, transform_indices = @transform_2, window_bounds = array<i64: 8, 9>}, {transform_indices = @transform_3, window_bounds = array<i64: 1, 8, 128>}]} {
    %c0 = arith.constant 0 : index
    %c0_0 = arith.constant 0 : index
    %c0_1 = arith.constant 0 : index
    %0 = vector.load %arg2[%c0, %c0_0, %c0_1] : memref<1x2x128xf32, #tpu.memory_space<vmem>>, vector<1x1x128xf32>
    %1 = vector.shape_cast %0 : vector<1x1x128xf32> to vector<128xf32>
    %c0_2 = arith.constant 0 : index
    %c0_3 = arith.constant 0 : index
    %c0_4 = arith.constant 0 : index
    %2 = vector.load %arg3[%c0_2, %c0_3, %c0_4] : memref<1x2x128xf32, #tpu.memory_space<vmem>>, vector<1x1x128xf32>
    %3 = vector.shape_cast %2 : vector<1x1x128xf32> to vector<128xf32>
    %4 = tpu.concatenate %1, %3 in 0 : vector<128xf32>, vector<128xf32> -> vector<256xf32>
    %5 = vector.extract_strided_slice %4 {offsets = [0], sizes = [128], strides = [1]} : vector<256xf32> to vector<128xf32>
    %6 = vector.extract_strided_slice %4 {offsets = [1], sizes = [128], strides = [1]} : vector<256xf32> to vector<128xf32>
    %7 = vector.extract_strided_slice %4 {offsets = [2], sizes = [128], strides = [1]} : vector<256xf32> to vector<128xf32>
    %8 = vector.extract_strided_slice %4 {offsets = [3], sizes = [128], strides = [1]} : vector<256xf32> to vector<128xf32>
    %9 = vector.extract_strided_slice %4 {offsets = [4], sizes = [128], strides = [1]} : vector<256xf32> to vector<128xf32>
    %10 = vector.extract_strided_slice %4 {offsets = [5], sizes = [128], strides = [1]} : vector<256xf32> to vector<128xf32>
    %11 = vector.extract_strided_slice %4 {offsets = [6], sizes = [128], strides = [1]} : vector<256xf32> to vector<128xf32>
    %12 = vector.extract_strided_slice %4 {offsets = [7], sizes = [128], strides = [1]} : vector<256xf32> to vector<128xf32>
    %13 = vector.extract_strided_slice %4 {offsets = [8], sizes = [128], strides = [1]} : vector<256xf32> to vector<128xf32>
    %14 = vector.shape_cast %5 : vector<128xf32> to vector<1x128xf32>
    %15 = vector.shape_cast %6 : vector<128xf32> to vector<1x128xf32>
    %16 = vector.shape_cast %7 : vector<128xf32> to vector<1x128xf32>
    %17 = vector.shape_cast %8 : vector<128xf32> to vector<1x128xf32>
    %18 = vector.shape_cast %9 : vector<128xf32> to vector<1x128xf32>
    %19 = vector.shape_cast %10 : vector<128xf32> to vector<1x128xf32>
    %20 = vector.shape_cast %11 : vector<128xf32> to vector<1x128xf32>
    %21 = vector.shape_cast %12 : vector<128xf32> to vector<1x128xf32>
    %22 = vector.shape_cast %13 : vector<128xf32> to vector<1x128xf32>
    %23 = tpu.concatenate %14, %15, %16, %17, %18, %19, %20, %21, %22 in 0 : vector<1x128xf32>, vector<1x128xf32>, vector<1x128xf32>, vector<1x128xf32>, vector<1x128xf32>, vector<1x128xf32>, vector<1x128xf32>, vector<1x128xf32>, vector<1x128xf32> -> vector<9x128xf32>
    %c0_5 = arith.constant 0 : index
    %c0_6 = arith.constant 0 : index
    %24 = vector.load %arg4[%c0_5, %c0_6] : memref<8x9xf32, #tpu.memory_space<vmem>>, vector<4x9xf32>
    %cst = arith.constant dense<0.000000e+00> : vector<4x128xf32>
    %25 = tpu.matmul %24, %23, %cst {dimension_numbers = #tpu.dot_dimension_numbers<[1], [0], [0], [1], [0, 0, 1, 1], [], []>, precision = #tpu.contract_precision<fp32>} : vector<4x9xf32>, vector<9x128xf32>, vector<4x128xf32> -> vector<4x128xf32>
    %c0_7 = arith.constant 0 : index
    %c1 = arith.constant 1 : index
    %c0_8 = arith.constant 0 : index
    %26 = vector.load %arg2[%c0_7, %c1, %c0_8] : memref<1x2x128xf32, #tpu.memory_space<vmem>>, vector<1x1x128xf32>
    %27 = vector.shape_cast %26 : vector<1x1x128xf32> to vector<128xf32>
    %c0_9 = arith.constant 0 : index
    %c1_10 = arith.constant 1 : index
    %c0_11 = arith.constant 0 : index
    %28 = vector.load %arg3[%c0_9, %c1_10, %c0_11] : memref<1x2x128xf32, #tpu.memory_space<vmem>>, vector<1x1x128xf32>
    %29 = vector.shape_cast %28 : vector<1x1x128xf32> to vector<128xf32>
    %30 = tpu.concatenate %27, %29 in 0 : vector<128xf32>, vector<128xf32> -> vector<256xf32>
    %31 = vector.extract_strided_slice %30 {offsets = [0], sizes = [128], strides = [1]} : vector<256xf32> to vector<128xf32>
    %32 = vector.extract_strided_slice %30 {offsets = [1], sizes = [128], strides = [1]} : vector<256xf32> to vector<128xf32>
    %33 = vector.extract_strided_slice %30 {offsets = [2], sizes = [128], strides = [1]} : vector<256xf32> to vector<128xf32>
    %34 = vector.extract_strided_slice %30 {offsets = [3], sizes = [128], strides = [1]} : vector<256xf32> to vector<128xf32>
    %35 = vector.extract_strided_slice %30 {offsets = [4], sizes = [128], strides = [1]} : vector<256xf32> to vector<128xf32>
    %36 = vector.extract_strided_slice %30 {offsets = [5], sizes = [128], strides = [1]} : vector<256xf32> to vector<128xf32>
    %37 = vector.extract_strided_slice %30 {offsets = [6], sizes = [128], strides = [1]} : vector<256xf32> to vector<128xf32>
    %38 = vector.extract_strided_slice %30 {offsets = [7], sizes = [128], strides = [1]} : vector<256xf32> to vector<128xf32>
    %39 = vector.extract_strided_slice %30 {offsets = [8], sizes = [128], strides = [1]} : vector<256xf32> to vector<128xf32>
    %40 = vector.shape_cast %31 : vector<128xf32> to vector<1x128xf32>
    %41 = vector.shape_cast %32 : vector<128xf32> to vector<1x128xf32>
    %42 = vector.shape_cast %33 : vector<128xf32> to vector<1x128xf32>
    %43 = vector.shape_cast %34 : vector<128xf32> to vector<1x128xf32>
    %44 = vector.shape_cast %35 : vector<128xf32> to vector<1x128xf32>
    %45 = vector.shape_cast %36 : vector<128xf32> to vector<1x128xf32>
    %46 = vector.shape_cast %37 : vector<128xf32> to vector<1x128xf32>
    %47 = vector.shape_cast %38 : vector<128xf32> to vector<1x128xf32>
    %48 = vector.shape_cast %39 : vector<128xf32> to vector<1x128xf32>
    %49 = tpu.concatenate %40, %41, %42, %43, %44, %45, %46, %47, %48 in 0 : vector<1x128xf32>, vector<1x128xf32>, vector<1x128xf32>, vector<1x128xf32>, vector<1x128xf32>, vector<1x128xf32>, vector<1x128xf32>, vector<1x128xf32>, vector<1x128xf32> -> vector<9x128xf32>
    %c4 = arith.constant 4 : index
    %c0_12 = arith.constant 0 : index
    %50 = vector.load %arg4[%c4, %c0_12] : memref<8x9xf32, #tpu.memory_space<vmem>>, vector<4x9xf32>
    %cst_13 = arith.constant dense<0.000000e+00> : vector<4x128xf32>
    %51 = tpu.matmul %50, %49, %cst_13 {dimension_numbers = #tpu.dot_dimension_numbers<[1], [0], [0], [1], [0, 0, 1, 1], [], []>, precision = #tpu.contract_precision<fp32>} : vector<4x9xf32>, vector<9x128xf32>, vector<4x128xf32> -> vector<4x128xf32>
    %52 = tpu.concatenate %25, %51 in 0 : vector<4x128xf32>, vector<4x128xf32> -> vector<8x128xf32>
    %c0_14 = arith.constant 0 : index
    %c0_15 = arith.constant 0 : index
    %c0_16 = arith.constant 0 : index
    %53 = vector.load %arg5[%c0_14, %c0_15, %c0_16] : memref<1x8x128xf32, #tpu.memory_space<vmem>>, vector<1x8x128xf32>
    %54 = vector.shape_cast %53 : vector<1x8x128xf32> to vector<8x128xf32>
    %55 = vector.shape_cast %52 : vector<8x128xf32> to vector<1x8x128xf32>
    tpu.vector_store %arg5[%c0_14, %c0_15, %c0_16], %55 {strides = array<i32>} : memref<1x8x128xf32, #tpu.memory_space<vmem>>, vector<1x8x128xf32>,
    return
  }
  func.func @transform_0(%arg0: i32, %arg1: i32) -> (i32, i32, i32) {
    %c0_i32 = arith.constant 0 : i32
    %c0_i32_0 = arith.constant 0 : i32
    return %arg0, %c0_i32, %arg1 : i32, i32, i32
  }
  func.func @transform_1(%arg0: i32, %arg1: i32) -> (i32, i32, i32) {
    %c1_i32 = arith.constant 1 : i32
    %0 = arith.addi %arg1, %c1_i32 : i32
    %c0_i32 = arith.constant 0 : i32
    %c0_i32_0 = arith.constant 0 : i32
    return %arg0, %c0_i32, %0 : i32, i32, i32
  }
  func.func @transform_2(%arg0: i32, %arg1: i32) -> (i32, i32) {
    %c0_i32 = arith.constant 0 : i32
    %c0_i32_0 = arith.constant 0 : i32
    %c0_i32_1 = arith.constant 0 : i32
    return %c0_i32, %c0_i32_0 : i32, i32
  }
  func.func @transform_3(%arg0: i32, %arg1: i32) -> (i32, i32, i32) {
    %c0_i32 = arith.constant 0 : i32
    %c0_i32_0 = arith.constant 0 : i32
    return %arg0, %c0_i32, %arg1 : i32, i32, i32
  }
}

</mosaic_0001>

<bundles_post_ra>
// kernel: tpu_custom_call.1
= control target key start
LH: loop header
LB: loop body
LE: loop exit
PB: predicated region body
PF: predicated region fallthrough
CT: control target
= control target key end

     0   :  { %s2290_s0 = inlined_call_operand.hbm [shape: f32[2,2,256], index: 0, kind: input, shape index: {}]   ;;  %s2291_s1 = inlined_call_operand.hbm [shape: f32[2,2,256], index: 1, kind: input, shape index: {}]   ;;  %s2292_s2 = inlined_call_operand.hbm [shape: f32[8,9], index: 2, kind: input, shape index: {}]   ;;  %s2293_s3 = inlined_call_operand.hbm [shape: f32[2,8,128], index: 3, kind: output, shape index: {}]  }
   0x1   :  { %2295 = sst [smem:[#allocation13_spill]] %s2290_s0 }
   0x2   :  { %2296 = sst [smem:[#allocation14_spill]] %s2291_s1 }
   0x3   :  { %8 = vsyncpa [#allocation3], 0 }
   0x4   :  { %10 = vsyncpa [#allocation3 + $0x1], 0 }
   0x5   :  { %11 = vsyncpa [#allocation6], 0 }
   0x6   :  { %13 = vsyncpa [#allocation6 + $0x1], 0 }
   0x7   :  { %14 = vsyncpa [#allocation4], 0 }
   0x8   :  { %16 = vsyncpa [#allocation4 + $0x1], 0  ;;  %s1954_s12 = smov 0   ;;  %s1956_s13 = smov 0  }
   0x9   :  { %s1958_s14 = smov 0   ;;  %s1960_s15 = smov 0  }
   0xa   :  { %s1962_s16 = smov 0   ;;  %s1964_s17 = smov 0  }
   0xb LB: > { %s1985_s18 = sadd.s32 4294967295, %s1917_s17   ;;  %s1514_s19 = sadd.s32 4294967294, %s1917_s17   ;;  %s1917_s17 = sphi %s1964_s17, %s22_s17   ;;  %s1913_s16 = sphi %s1962_s16, %s2315_s16   ;;  %s1909_s15 = sphi %s1960_s15, %s2314_s15   ;;  %s1905_s14 = sphi %s1958_s14, %s2313_s14   ;;  %s1901_s13 = sphi %s1956_s13, %s2312_s13   ;;  %s1897_s12 = sphi %s1954_s12, %s2311_s12  }
   0xc   : > { %p56_p0 = scmp.ne.s32.totalorder %s1901_s13, %s1897_s12  ;;  %p57_p1 = scmp.eq.s32.totalorder %s1985_s18, 0 }
   0xd   : > { %p139_p3 = scmp.eq.s32.totalorder %s1514_s19, 1  ;;  %p1515_p5 = scmp.ge.s32.totalorder %s1917_s17, 1 }
   0xe   : > { %p1994_p4 = por %p57_p1, %p56_p0  ;;  %p146_p7 = scmp.lt.s32.totalorder %s1917_s17, 3 }
   0xf   : > { %p1999_p6 = por %p139_p3, %p56_p0  ;;  %s1919_s23 = smov [#allocation7]  }
  0x10   : > { %p2004_p8 = pnand %p1515_p5, %p146_p7  ;;  %s159_s24 = sshll.u32 %s1919_s23, 4  ;;  %s160_s24 = int_to_ptr.vmem [resolvable:$true] %s159_s24 }
  0x11   : > { %s2298_s21 = scalar_select %p1999_p6, 1, 0 }
  0x12   : > { %p1665_p10 = pneg %p2004_p8  ;;  %s34_s26 = sadd.s32 1, %s1913_s16 }
  0x13   : > { %s43_s27 = sadd.s32 1, %s1905_s14  ;;  %p36_p12 = scmp.ge.s32.totalorder %s34_s26, 2 }
  0x14   : > { %p2013_p11 = pnand %p1665_p10, %p57_p1  ;;  %s1757_s28 = scalar_lea.vmem %s160_s24, 128 }
  0x15   : > { %p1758_p0 = scmp.ne.s32.totalorder %s160_s24, %s1757_s28  ;;  %p1765_p7 = scmp.lt.s32.totalorder %s160_s24, %s160_s24 }
  0x16   : > { %p1748_p13 = pneg %p2013_p11  ;;  %p1766_p2 = scmp.lt.s32.totalorder %s1757_s28, %s1757_s28 }
  0x18   : > { %p1760_p3 = pnand %p1758_p0, %p1748_p13  ;;  %p1767_p9 = por %p1766_p2, %p1765_p7 }
  0x1a   : > { %p1761_p5 = pneg %p1760_p3 }
  0x1c   : > { %p1768_p6 = pnand %p1767_p9, %p1761_p5 }
  0x1e   : > { %1771 = shalt.err (!%p1768_p6)
}
  0x1f   : > { %1668 = dma.hbm_to_vmem [thread:$0]  (!%p2013_p11), %s2292_s2, 128, %s160_s24, [#allocation6]  }
  0x20   : > { %s2317_s26 = smov (%p36_p12, %s34_s26), 0  ;;  %p50_p2 = scmp.ne.s32.totalorder %s1905_s14, %s1901_s13 }
  0x21   : > { %p51_p6 = scmp.eq.s32.totalorder %s1917_s17, 0  ;;  %s38_s4 = ssub.s32 %s1913_s16, %s2317_s26 }
  0x22   : > { %p1681_p9 = scmp.lt.s32.totalorder %s1917_s17, 2  ;;  %p41_p10 = scmp.eq.s32.totalorder %s38_s4, 0 }
  0x23   : > { %p52_p13 = por %p51_p6, %p50_p2  ;;  %p2301_p0 = scmp.eq.s32.totalorder %s1985_s18, 1 }
  0x24   : > { %s170_s6 = sand.u32 1, %s1905_s14   ;;  %s1533_s9 = sshll.u32 %s1913_s16, 6 }
  0x25   : > { %p2036_p3 = por %p2301_p0, %p50_p2  ;;  %s1518_s8 = sshll.u32 %s170_s6, 1 }
  0x26   : > { %s2042_s7 = scalar_select %p41_p10, %s1905_s14, %s43_s27  }
  0x27   : > { %s2303_s0 = sld [smem:[#allocation13_spill]]  ;;  %s174_s23 = scalar_lea.vmem [#allocation2], %s1518_s8 }
  0x28   : > { %s183_s24 = sshll.u32 %s174_s23, 4  ;;  %p2048_p11 = pnand %p1681_p9, %p52_p13  ;;  %s184_s24 = int_to_ptr.vmem [resolvable:$true] %s183_s24 }
  0x29   : > { %s2305_s1 = sld [smem:[#allocation14_spill]]  ;;  %s190_s30 = sand.u32 1, %s1917_s17  }
  0x2a   : > { %s171_s4 = scalar_lea.sflag [#allocation3], %s170_s6  ;;  %p1774_p12 = pneg %p2048_p11 }
  0x2b   : > { %s1785_s10 = scalar_lea.vmem %s184_s24, 32  ;;  %s1920_s11 = smov [#allocation2]  }
  0x2c   : > { %p1786_p5 = scmp.ne.s32.totalorder %s184_s24, %s1785_s10  ;;  %s1790_s23 = sshll.u32 %s1920_s11, 4  ;;  %s1791_s23 = int_to_ptr.vmem [resolvable:$false] %s1790_s23 }
  0x2d   : > { %s181_s19 = scalar_lea.hbm %s2303_s0, %s1533_s9  ;;  %s1792_s0 = scalar_lea.vmem %s1791_s23, 64 }
  0x2e   : > { %p1788_p7 = pnand %p1786_p5, %p1774_p12  ;;  %p1793_p6 = scmp.lt.s32.totalorder %s184_s24, %s1791_s23 }
  0x2f   : > { %s2055_s27 = scalar_lea.hbm %s2305_s1, %s1533_s9  ;;  %p1794_p9 = scmp.lt.s32.totalorder %s1792_s0, %s1785_s10 }
  0x30   : > { %p1789_p2 = pneg %p1788_p7 }
  0x31   : > { %p1795_p10 = por %p1794_p9, %p1793_p6 }
  0x33   : > { %p1796_p13 = pnand %p1795_p10, %p1789_p2 }
  0x35   : > { %1799 = shalt.err (!%p1796_p13)
}
  0x36   : > { %1672 = dma.hbm_to_vmem [thread:$0]  (!%p2048_p11), %s181_s19, 32, %s184_s24, %s171_s4  }
  0x37   : > { %s1438_s6 = scalar_lea.hbm %s2055_s27, 32  ;;  %s194_s9 = scalar_lea.vmem [#allocation5], %s1518_s8 }
  0x38   : > { %s204_s28 = sshll.u32 %s194_s9, 4  ;;  %s191_s29 = scalar_lea.sflag [#allocation6], %s190_s30  ;;  %s205_s28 = int_to_ptr.vmem [resolvable:$true] %s204_s28 }
  0x39   : > { %s1813_s1 = scalar_lea.vmem %s205_s28, 32  ;;  %s1921_s0 = smov [#allocation5]  }
  0x3a   : > { %p1814_p0 = scmp.ne.s32.totalorder %s205_s28, %s1813_s1  ;;  %s1818_s10 = sshll.u32 %s1921_s0, 4  ;;  %s1819_s10 = int_to_ptr.vmem [resolvable:$false] %s1818_s10 }
  0x3b   : > { %s1820_s11 = scalar_lea.vmem %s1819_s10, 64  ;;  %p1821_p2 = scmp.lt.s32.totalorder %s205_s28, %s1819_s10 }
  0x3c   : > { %p1816_p5 = pnand %p1814_p0, %p1774_p12  ;;  %p1822_p6 = scmp.lt.s32.totalorder %s1820_s11, %s1813_s1 }
  0x3e   : > { %p1817_p7 = pneg %p1816_p5  ;;  %p1823_p9 = por %p1822_p6, %p1821_p2 }
  0x40   : > { %p1824_p10 = pnand %p1823_p9, %p1817_p7 }
  0x42   : > { %1827 = shalt.err (!%p1824_p10)
}
  0x43   : > { %1675 = dma.hbm_to_vmem [thread:$0]  (!%p2048_p11), %s1438_s6, 32, %s205_s28, %s191_s29  }
  0x44   : > { %213 = sbr.rel (%p2004_p8) target bundleno = 500 (0x1f4), region = 32  ;;  %s2074_s8 = sand.u32 (!%p2004_p8), 1, %s1901_s13  }
  0x45   : > { %s1525_s19 = sshll.u32 (!%p2004_p8), %s2074_s8, 1  ;;  %s216_s24 = scalar_lea.sflag (!%p2004_p8), [#allocation3], %s2074_s8 }
  0x46   : > { %s2078_s27 = scalar_lea.vmem (!%p2004_p8), [#allocation2], %s1525_s19 }
  0x49   : > { %1880 = dma.done.wait (%p1994_p4), %s216_s24, 32  }
  0x4a   : > { %1882 = vsyncadd (%p1994_p4), %s216_s24, 4294967264  ;;  %s224_s1 = sand.u32 1, %s1985_s18   ;;  %s2085_s25 = scalar_lea.vmem [#allocation5], %s1525_s19 }
  0x4b   : > { %s225_s22 = scalar_lea.sflag [#allocation6], %s224_s1 }
  0x4c   : > { %1884 = dma.done.wait (%p1994_p4), %s225_s22, 32  }
  0x4d   : > { %1886 = vsyncadd (%p1994_p4), %s225_s22, 4294967264 }
  0x4e   : > { %1888 = dma.done.wait (%p57_p1), [#allocation6], 128  }
  0x4f   : > { %1890 = vsyncadd (%p57_p1), [#allocation6], 4294967168  ;;  %v268_v0 = vlaneseq  ;;  %v1922_v1 = vmov 1966171168   ;;  %v261_v8 = vld [vmem:[%s2078_s27] sm:$0x1] }
  0x50   : > { %v266_v2 = vunpack.c.l.s4 %v1922_v1  ;;  %v1744_v6 = vld [vmem:[%s2085_s25] ss:$0 sps:$4 sm:$0x11]   ;;  %s1923_s18 = smov 126   ;;  %s1924_s20 = smov 127   ;;  %v1926_v16 = vmov 0.0  }
  0x51   : > { %v269_v3 = vshrl.u32 %v268_v0, 7  ;;  %vm2097_vm0 = vcmp.lt.s32.totalorder %v268_v0, 128  ;;  %s1925_s30 = smov 125   ;;  %1571 = vmatprep.subr.mxu0 %v1926_v16  ;;  %1578 = vmatprep.subr.mxu1 %v1926_v16  ;;  %s1927_s4 = smov 124   ;;  %vm1930_vm1 = vmmov 0   ;;  %vm364_vm2 = vcmask 72704  }
  0x52   : > { %v267_v4 = vunpack.c.0.s8 %v266_v2  ;;  %v1745_v17 = vld [vmem:[%s2085_s25 + $0x1] ss:$0 sps:$4 sm:$0x11]   ;;  %s1928_s23 = smov 123   ;;  %s1929_s6 = smov 120   ;;  %1575 = vmatprep.mubr.msk.f32.mxu0 %vm1930_vm1, %v1926_v16  ;;  %1582 = vmatprep.mubr.msk.f32.mxu1 %vm1930_vm1, %v1926_v16  ;;  %vm298_vm3 = vcmask 1039360  }
  0x53   : > { %v288_v10 = vsub.s32 0, %v269_v3  ;;  %v292_v12 = vsub.s32 1, %v269_v3  ;;  %v829_v20 = vld [vmem:[%s2078_s27 + $0x1] sm:$0x1]  ;;  %s1931_s9 = smov 122   ;;  %s1932_s28 = smov 121  }
  0x54   : > { %v270_v5 = vsub.s32 %v267_v4, %v269_v3  ;;  %v363_v30 = vld [vmem:[#allocation7] sm:$0xf]  ;;  %vm347_vm4 = vcmask 982016   ;;  %vm305_vm5 = vcmask 1031168   ;;  %vm349_vm6 = vcmask 1040384   ;;  %s1528_s29 = sshll.u32 %s2074_s8, 3 }
  0x55   : > { %v366_v31 = vsel %vm364_vm2, %v363_v30, 0  ;;  %vm312_vm7 = vcmask 1022976   ;;  %vm2294_vm8 = vcmask 1041408   ;;  %vm319_vm9 = vcmask 1014784   ;;  %s1530_s0 = sshll.u32 %s1909_s15, 7  ;;  %s259_s10 = scalar_lea.vmem [#allocation8], %s1528_s29 }
  0x56   : > { %v271_v7 = vrot.slane %v1744_v6, %v270_v5  ;;  %v839_v18 = vrot.slane %v1745_v17, %v270_v5  ;;  %v2138_v34 = vand.u32 4294901760, %v366_v31  ;;  %vm326_vm10 = vcmask 1006592   ;;  %s1397_s11 = sshll.u32 %s259_s10, 4  ;;  %s2247_s27 = scalar_lea.hbm %s2293_s3, %s1530_s0  ;;  %s1398_s11 = int_to_ptr.vmem [resolvable:$true] %s1397_s11 }
  0x57   : > { %vm353_vm11 = vcmask 1042432   ;;  %vm333_vm12 = vcmask 998400   ;;  %vm355_vm13 = vcmask 1043456   ;;  %vm357_vm14 = vcmask 1044480   ;;  %s1383_s1 = scalar_lea.sflag [#allocation4], %s2074_s8  ;;  %s1829_s22 = scalar_lea.vmem %s1398_s11, 128 }
  0x58   : > { %v278_v11 = vrot.slane %v271_v7, %v270_v5  ;;  %v846_v19 = vrot.slane %v839_v18, %v270_v5  ;;  %v2141_v37 = vsub.f32 %v366_v31, %v2138_v34  ;;  %vm359_vm15 = vcmask 1045504   ;;  %p1830_p1 = scmp.ne.s32.totalorder %s1398_s11, %s1829_s22  ;;  %s1933_s15 = smov [#allocation8]  }
  0x59   : > { %s1833_s25 = sshll.u32 %s1933_s15, 4  ;;  %s1834_s25 = int_to_ptr.vmem [resolvable:$false] %s1833_s25 }
  0x5a   : > { %v2103_v13 = vsel %vm2097_vm0, %v261_v8, %v278_v11  ;;  %v2125_v21 = vsel %vm2097_vm0, %v829_v20, %v846_v19  ;;  %v439_v45 = vand.u32 4294901760, %v2141_v37  ;;  %vm340_vm0 = vcmask 990208   ;;  %p1831_p4 = pnand %p1830_p1, %p2036_p3  ;;  %p1836_p11 = scmp.lt.s32.totalorder %s1398_s11, %s1834_s25 }
  0x5b   : > { %v289_v14 = vrot.slane %v2103_v13, %v288_v10  ;;  %v293_v15 = vrot.slane %v2103_v13, %v292_v12  ;;  %v857_v22 = vrot.slane %v2125_v21, %v292_v12  ;;  %v853_v23 = vrot.slane %v2125_v21, %v288_v10 }
  0x5c   : > { %v440_v56 = vsub.f32 %v2141_v37, %v439_v45  ;;  %p1832_p8 = pneg %p1831_p4 }
  0x5d   : > { %301 = vrot.lane.b32.xlu1 %v289_v14, %s1923_s18  ;;  %294 = vrot.lane.b32.xlu0 %v289_v14, %s1924_s20 }
  0x5e   : > { %v441_v2 = vand.u32 4294901760, %v440_v56 }
  0x61   : > { %303 = vrot.lane.b32.xlu1 %v293_v15, %s1923_s18  ;;  %296 = vrot.lane.b32.xlu0 %v293_v15, %s1924_s20 }
  0x65   : > { %310 = vrot.lane.b32.xlu1 %v293_v15, %s1925_s30  ;;  %308 = vrot.lane.b32.xlu0 %v289_v14, %s1925_s30 }
  0x69   : > { %317 = vrot.lane.b32.xlu1 %v293_v15, %s1927_s4  ;;  %315 = vrot.lane.b32.xlu0 %v289_v14, %s1927_s4 }
  0x6d   : > { %324 = vrot.lane.b32.xlu1 %v293_v15, %s1928_s23  ;;  %322 = vrot.lane.b32.xlu0 %v289_v14, %s1928_s23 }
  0x71   : > { %345 = vrot.lane.b32.xlu1 %v293_v15, %s1929_s6  ;;  %343 = vrot.lane.b32.xlu0 %v289_v14, %s1929_s6 }
  0x75   : > { %331 = vrot.lane.b32.xlu1 %v293_v15, %s1931_s9  ;;  %329 = vrot.lane.b32.xlu0 %v289_v14, %s1931_s9 }
  0x79   : > { %338 = vrot.lane.b32.xlu1 %v293_v15, %s1932_s28  ;;  %336 = vrot.lane.b32.xlu0 %v289_v14, %s1932_s28 }
  0x7d   : > { %860 = vrot.lane.b32.xlu1 %v857_v22, %s1924_s20  ;;  %858 = vrot.lane.b32.xlu0 %v853_v23, %s1924_s20 }
  0x81   : > { %866 = vrot.lane.b32.xlu1 %v857_v22, %s1923_s18  ;;  %864 = vrot.lane.b32.xlu0 %v853_v23, %s1923_s18  ;;  %s1835_s18 = scalar_lea.vmem %s1834_s25, 256 }
  0x82   : > { %p1837_p12 = scmp.lt.s32.totalorder %s1835_s18, %s1829_s22 }
  0x84   : > { %p1838_p13 = por %p1837_p12, %p1836_p11 }
  0x85   : > { %872 = vrot.lane.b32.xlu1 %v857_v22, %s1925_s30  ;;  %870 = vrot.lane.b32.xlu0 %v853_v23, %s1925_s30 }
  0x86   : > { %p1839_p0 = pnand %p1838_p13, %p1832_p8 }
  0x89   : > { %878 = vrot.lane.b32.xlu1 %v857_v22, %s1927_s4  ;;  %876 = vrot.lane.b32.xlu0 %v853_v23, %s1927_s4 }
  0x8d   : > { %884 = vrot.lane.b32.xlu1 %v857_v22, %s1928_s23  ;;  %882 = vrot.lane.b32.xlu0 %v853_v23, %s1928_s23 }
  0x91   : > { %902 = vrot.lane.b32.xlu1 %v857_v22, %s1929_s6  ;;  %900 = vrot.lane.b32.xlu0 %v853_v23, %s1929_s6 }
  0x95   : > { %890 = vrot.lane.b32.xlu1 %v857_v22, %s1931_s9  ;;  %888 = vrot.lane.b32.xlu0 %v853_v23, %s1931_s9 }
  0x99   : > { %896 = vrot.lane.b32.xlu1 %v857_v22, %s1932_s28  ;;  %894 = vrot.lane.b32.xlu0 %v853_v23, %s1932_s28 }
  0xcf   : > { %v302_v24 = vpop.permute.xlu1 %301  ;;  %v295_v25 = vpop.permute.xlu0 %294 }
  0xd3   : > { %v304_v26 = vpop.permute.xlu1 %303  ;;  %v297_v27 = vpop.permute.xlu0 %296 }
  0xd4   : > { %v299_v38 = vsel %vm298_vm3, %v295_v25, %v297_v27  ;;  %v306_v42 = vsel %vm305_vm5, %v302_v24, %v304_v26 }
  0xd5   : > { %v350_v43 = vsel %vm349_vm6, %v2103_v13, %v299_v38  ;;  %v912_v13 = vld [vmem:[#allocation7 + $0x4] sm:$0xf] }
  0xd6   : > { %v352_v51 = vsel %vm2294_vm8, %v350_v43, %v306_v42  ;;  %vm361_vm8 = vcmask 1046528   ;;  %v914_v17 = vsel %vm364_vm2, %v912_v13, 0  ;;  %vm2308_vm2 = vcmask 1041408  }
  0xd7   : > { %v311_v28 = vpop.permute.xlu1 %310  ;;  %v309_v29 = vpop.permute.xlu0 %308  ;;  %v2188_v20 = vand.u32 4294901760, %v914_v17 }
  0xd8   : > { %v313_v46 = vsel %vm312_vm7, %v309_v29, %v311_v28 }
  0xd9   : > { %v354_v54 = vsel %vm353_vm11, %v352_v51, %v313_v46  ;;  %v986_v24 = vsub.f32 %v914_v17, %v2188_v20 }
  0xdb   : > { %v318_v32 = vpop.permute.xlu1 %317  ;;  %v316_v33 = vpop.permute.xlu0 %315  ;;  %v987_v31 = vand.u32 4294901760, %v986_v24 }
  0xdc   : > { %v320_v48 = vsel %vm319_vm9, %v316_v33, %v318_v32 }
  0xdd   : > { %v356_v57 = vsel %vm355_vm13, %v354_v54, %v320_v48  ;;  %v988_v43 = vsub.f32 %v986_v24, %v987_v31 }
  0xdf   : > { %v325_v35 = vpop.permute.xlu1 %324  ;;  %v323_v36 = vpop.permute.xlu0 %322 }
  0xe0   : > { %v327_v52 = vsel %vm326_vm10, %v323_v36, %v325_v35 }
  0xe1   : > { %v358_v59 = vsel %vm357_vm14, %v356_v57, %v327_v52  ;;  %v989_v52 = vand.u32 4294901760, %v988_v43 }
  0xe3   : > { %v346_v39 = vpop.permute.xlu1 %345  ;;  %v344_v40 = vpop.permute.xlu0 %343 }
  0xe4   : > { %v348_v41 = vsel %vm347_vm4, %v344_v40, %v346_v39 }
  0xe5   : > { %v368_v44 = vsel %vm349_vm6, %v348_v41, 0 }
  0xe6   : > { %v2151_v47 = vand.u32 4294901760, %v368_v44 }
  0xe7   : > { %v332_v49 = vpop.permute.xlu1 %331  ;;  %v330_v50 = vpop.permute.xlu0 %329 }
  0xe8   : > { %v477_v53 = vsub.f32 %v368_v44, %v2151_v47  ;;  %1572 = vmatpush3.msra.mxu0 %v2151_v47  ;;  %v334_v55 = vsel %vm333_vm12, %v330_v50, %v332_v49 }
  0xe9   : > { %1573 = vmatprep.subr.mxu0 %v1926_v16  ;;  %v360_v62 = vsel %vm359_vm15, %v358_v59, %v334_v55 }
  0xea   : > { %v478_v58 = vand.u32 4294901760, %v477_v53 }
  0xeb   : > { %v339_v60 = vpop.permute.xlu1 %338  ;;  %v337_v61 = vpop.permute.xlu0 %336 }
  0xec   : > { %v341_v63 = vsel %vm340_vm0, %v337_v61, %v339_v60  ;;  %v479_v0 = vsub.f32 %v477_v53, %v478_v58 }
  0xed   : > { %v362_v1 = vsel %vm361_vm8, %v360_v62, %v341_v63 }
  0xee   : > { %v402_v3 = vand.u32 4294901760, %v362_v1  ;;  %v480_v4 = vand.u32 4294901760, %v479_v0 }
  0xef   : > { %v861_v5 = vpop.permute.xlu1 %860  ;;  %v859_v6 = vpop.permute.xlu0 %858 }
  0xf0   : > { %v484_v7 = vsub.f32 %v362_v1, %v402_v3  ;;  %1574 = vmatpush3.msra.mxu0 %v402_v3  ;;  %1579 = vmatpush3.msra.mxu1 %v480_v4  ;;  %v862_v27 = vsel %vm298_vm3, %v859_v6, %v861_v5 }
  0xf1   : > { %1585 = vmatprep.subr.mxu0 %v1926_v16  ;;  %1576 = vmatmul.mubr.f32.vlgmr.msra.gmra.mxu0 %v441_v2 }
  0xf2   : > { %1586 = vmatpush3.msra.mxu0 %v477_v53  ;;  %1589 = vmatprep.mubr.msk.f32.mxu0 %vm1930_vm1, %v1926_v16  ;;  %v485_v8 = vand.u32 4294901760, %v484_v7 }
  0xf3   : > { %v867_v9 = vpop.permute.xlu1 %866  ;;  %1587 = vmatprep.subr.mxu0 %v1926_v16  ;;  %v865_v10 = vpop.permute.xlu0 %864  ;;  %1580 = vmatprep.subr.mxu1 %v1926_v16 }
  0xf4   : > { %1588 = vmatpush3.msra.mxu0 %v484_v7  ;;  %v486_v11 = vsub.f32 %v484_v7, %v485_v8  ;;  %v868_v29 = vsel %vm305_vm5, %v865_v10, %v867_v9 }
  0xf5   : > { %1599 = vmatprep.subr.mxu0 %v1926_v16  ;;  %1590 = vmatmul.mubr.f32.vlgmr.msra.gmra.mxu0 %v2141_v37 }
  0xf6   : > { %1600 = vmatpush3.msra.mxu0 %v478_v58  ;;  %v487_v12 = vand.u32 4294901760, %v486_v11  ;;  %1603 = vmatprep.mubr.msk.f32.mxu0 %vm1930_vm1, %v1926_v16 }
  0xf7   : > { %v873_v14 = vpop.permute.xlu1 %872  ;;  %1601 = vmatprep.subr.mxu0 %v1926_v16  ;;  %v871_v15 = vpop.permute.xlu0 %870 }
  0xf8   : > { %1581 = vmatpush3.msra.mxu1 %v487_v12  ;;  %1602 = vmatpush3.msra.mxu0 %v485_v8  ;;  %v874_v32 = vsel %vm312_vm7, %v871_v15, %v873_v14 }
  0xf9   : > { %1592 = vmatprep.subr.mxu1 %v1926_v16  ;;  %1583 = vmatmul.mubr.f32.vlgmr.msra.gmra.mxu1 %v2138_v34 }
  0xfa   : > { %1593 = vmatpush3.msra.mxu1 %v2151_v47  ;;  %1596 = vmatprep.mubr.msk.f32.mxu1 %vm1930_vm1, %v1926_v16 }
  0xfb   : > { %v879_v18 = vpop.permute.xlu1 %878  ;;  %1594 = vmatprep.subr.mxu1 %v1926_v16  ;;  %v877_v19 = vpop.permute.xlu0 %876  ;;  %1613 = vmatprep.subr.mxu0 %v1926_v16 }
  0xfc   : > { %1595 = vmatpush3.msra.mxu1 %v402_v3  ;;  %1604 = vmatmul.mubr.f32.vlgmr.msra.gmra.mxu0 %v2138_v34  ;;  %v880_v35 = vsel %vm319_vm9, %v877_v19, %v879_v18 }
  0xfd   : > { %1606 = vmatprep.subr.mxu1 %v1926_v16  ;;  %1597 = vmatmul.mubr.f32.vlgmr.msra.gmra.mxu1 %v439_v45 }
  0xfe   : > { %1607 = vmatpush3.msra.mxu1 %v2151_v47  ;;  %1610 = vmatprep.mubr.msk.f32.mxu1 %vm1930_vm1, %v1926_v16 }
  0xff   : > { %v885_v22 = vpop.permute.xlu1 %884  ;;  %1608 = vmatprep.subr.mxu1 %v1926_v16  ;;  %v883_v23 = vpop.permute.xlu0 %882  ;;  %1617 = vmatprep.mubr.msk.f32.mxu0 %vm1930_vm1, %v1926_v16 }
 0x100   : > { %1609 = vmatpush3.msra.mxu1 %v402_v3  ;;  %v886_v39 = vsel %vm326_vm10, %v883_v23, %v885_v22 }
 0x101   : > { %1620 = vmatprep.subr.mxu1 %v1926_v16  ;;  %1611 = vmatmul.mubr.f32.vlgmr.msra.gmra.mxu1 %v2138_v34  ;;  %v905_v34 = vsel %vm349_vm6, %v2125_v21, %v862_v27 }
 0x102   : > { %1624 = vmatprep.mubr.msk.f32.mxu1 %vm1930_vm1, %v1926_v16  ;;  %v906_v38 = vsel %vm2308_vm2, %v905_v34, %v868_v29 }
 0x103   : > { %v903_v25 = vpop.permute.xlu1 %902  ;;  %v901_v26 = vpop.permute.xlu0 %900  ;;  %v907_v41 = vsel %vm353_vm11, %v906_v38, %v874_v32 }
 0x104   : > { %v904_v28 = vsel %vm347_vm4, %v901_v26, %v903_v25  ;;  %v908_v44 = vsel %vm355_vm13, %v907_v41, %v880_v35 }
 0x105   : > { %v916_v30 = vsel %vm349_vm6, %v904_v28, 0  ;;  %v909_v45 = vsel %vm357_vm14, %v908_v44, %v886_v39 }
 0x106   : > { %v947_v33 = vand.u32 4294901760, %v916_v30 }
 0x107   : > { %v891_v36 = vpop.permute.xlu1 %890  ;;  %v889_v37 = vpop.permute.xlu0 %888 }
 0x108   : > { %v1025_v40 = vsub.f32 %v916_v30, %v947_v33  ;;  %1614 = vmatpush3.msra.mxu0 %v947_v33  ;;  %v892_v42 = vsel %vm333_vm12, %v889_v37, %v891_v36 }
 0x109   : > { %1615 = vmatprep.subr.mxu0 %v1926_v16  ;;  %v910_v48 = vsel %vm359_vm15, %v909_v45, %v892_v42 }
 0x10a   : > { %v1026_v21 = vand.u32 4294901760, %v1025_v40 }
 0x10b   : > { %v897_v46 = vpop.permute.xlu1 %896  ;;  %v895_v47 = vpop.permute.xlu0 %894 }
 0x10c   : > { %v898_v49 = vsel %vm340_vm0, %v895_v47, %v897_v46  ;;  %v1027_v50 = vsub.f32 %v1025_v40, %v1026_v21 }
 0x10d   : > { %v911_v51 = vsel %vm361_vm8, %v910_v48, %v898_v49 }
 0x10e   : > { %v950_v53 = vand.u32 4294901760, %v911_v51  ;;  %v1028_v54 = vand.u32 4294901760, %v1027_v50 }
 0x110   : > { %v1032_v55 = vsub.f32 %v911_v51, %v950_v53  ;;  %1616 = vmatpush3.msra.mxu0 %v950_v53  ;;  %1621 = vmatpush3.msra.mxu1 %v1028_v54 }
 0x111   : > { %1627 = vmatprep.subr.mxu0 %v1926_v16  ;;  %1618 = vmatmul.mubr.f32.vlgmr.msra.gmra.mxu0 %v989_v52 }
 0x112   : > { %v1033_v56 = vand.u32 4294901760, %v1032_v55  ;;  %1628 = vmatpush3.msra.mxu0 %v1025_v40  ;;  %1631 = vmatprep.mubr.msk.f32.mxu0 %vm1930_vm1, %v1926_v16 }
 0x113   : > { %1629 = vmatprep.subr.mxu0 %v1926_v16  ;;  %1622 = vmatprep.subr.mxu1 %v1926_v16 }
 0x114   : > { %1630 = vmatpush3.msra.mxu0 %v1032_v55  ;;  %v1034_v57 = vsub.f32 %v1032_v55, %v1033_v56 }
 0x115   : > { %1641 = vmatprep.subr.mxu0 %v1926_v16  ;;  %1632 = vmatmul.mubr.f32.vlgmr.msra.gmra.mxu0 %v986_v24 }
 0x116   : > { %1642 = vmatpush3.msra.mxu0 %v1026_v21  ;;  %v1035_v58 = vand.u32 4294901760, %v1034_v57  ;;  %1645 = vmatprep.mubr.msk.f32.mxu0 %vm1930_vm1, %v1926_v16 }
 0x117   : > { %1643 = vmatprep.subr.mxu0 %v1926_v16 }
 0x118   : > { %1623 = vmatpush3.msra.mxu1 %v1035_v58  ;;  %1644 = vmatpush3.msra.mxu0 %v1033_v56 }
 0x119   : > { %1625 = vmatmul.mubr.f32.vlgmr.msra.gmra.mxu1 %v2188_v20  ;;  %1634 = vmatprep.subr.mxu1 %v1926_v16 }
 0x11a   : > { %1635 = vmatpush3.msra.mxu1 %v947_v33  ;;  %1638 = vmatprep.mubr.msk.f32.mxu1 %vm1930_vm1, %v1926_v16 }
 0x11b   : > { %1636 = vmatprep.subr.mxu1 %v1926_v16  ;;  %1646 = vmatmul.mubr.f32.vlgmr.msra.gmra.mxu0 %v2188_v20 }
 0x11c   : > { %1637 = vmatpush3.msra.mxu1 %v950_v53 }
 0x11d   : > { %1639 = vmatmul.mubr.f32.vlgmr.msra.gmra.mxu1 %v987_v31  ;;  %1648 = vmatprep.subr.mxu1 %v1926_v16 }
 0x11e   : > { %1649 = vmatpush3.msra.mxu1 %v947_v33  ;;  %1652 = vmatprep.mubr.msk.f32.mxu1 %vm1930_vm1, %v1926_v16 }
 0x11f   : > { %1650 = vmatprep.subr.mxu1 %v1926_v16 }
 0x120   : > { %1651 = vmatpush3.msra.mxu1 %v950_v53 }
 0x121   : > { %1653 = vmatmul.mubr.f32.vlgmr.msra.gmra.mxu1 %v2188_v20 }
 0x1b1   : > { %v443_v59 = vpop.f32.mrf.mxu0 }
 0x1b3   : > { %v1577_v60 = vpop.f32.mrf.mxu0 }
 0x1b5   : > { %v600_v61 = vpop.f32.mrf.mxu0 }
 0x1b7   : > { %v1591_v62 = vpop.f32.mrf.mxu0 }
 0x1b9   : > { %v524_v63 = vpop.f32.mrf.mxu1 }
 0x1ba   : > { %v525_v9 = vadd.f32 %v524_v63, %v443_v59 }
 0x1bb   : > { %v1584_v0 = vpop.f32.mrf.mxu1 }
 0x1bc   : > { %v752_v1 = vpop.f32.mrf.mxu0  ;;  %v601_v11 = vadd.f32 %v600_v61, %v525_v9 }
 0x1bd   : > { %v675_v2 = vpop.f32.mrf.mxu1 }
 0x1be   : > { %v1605_v3 = vpop.f32.mrf.mxu0  ;;  %v676_v17 = vadd.f32 %v675_v2, %v601_v11 }
 0x1bf   : > { %v1598_v4 = vpop.f32.mrf.mxu1 }
 0x1c0   : > { %v753_v24 = vadd.f32 %v752_v1, %v676_v17 }
 0x1c1   : > { %v825_v5 = vpop.f32.mrf.mxu1 }
 0x1c2   : > { %v826_v29 = vadd.f32 %v825_v5, %v753_v24 }
 0x1c3   : > { %v1612_v6 = vpop.f32.mrf.mxu1 }
 0x1d1   : > { %v991_v7 = vpop.f32.mrf.mxu0 }
 0x1d3   : > { %v1619_v8 = vpop.f32.mrf.mxu0 }
 0x1d5   : > { %v1148_v16 = vpop.f32.mrf.mxu0 }
 0x1d7   : > { %v1633_v10 = vpop.f32.mrf.mxu0 }
 0x1d9   : > { %v1072_v12 = vpop.f32.mrf.mxu1 }
 0x1da   : > { %v1073_v13 = vadd.f32 %v1072_v12, %v991_v7 }
 0x1db   : > { %v1626_v14 = vpop.f32.mrf.mxu1  ;;  %v1300_v15 = vpop.f32.mrf.mxu0 }
 0x1dc   : > { %v1149_v18 = vadd.f32 %v1148_v16, %v1073_v13 }
 0x1dd   : > { %v1223_v19 = vpop.f32.mrf.mxu1  ;;  %v1647_v20 = vpop.f32.mrf.mxu0 }
 0x1de   : > { %v1224_v22 = vadd.f32 %v1223_v19, %v1149_v18 }
 0x1df   : > { %v1640_v23 = vpop.f32.mrf.mxu1 }
 0x1e0   : > { %v1301_v25 = vadd.f32 %v1300_v15, %v1224_v22 }
 0x1e1   : > { %v1373_v26 = vpop.f32.mrf.mxu1 }
 0x1e2   : > { %v1374_v27 = vadd.f32 %v1373_v26, %v1301_v25 }
 0x1e3   : > { %v1654_v28 = vpop.f32.mrf.mxu1 }
 0x1e4   : > { %v1378_v30 = vrot.slane %v1374_v27, 4 }
 0x1e6   : > { %v1380_v31 = vsel %vm355_vm13, %v826_v29, %v1378_v30 }
 0x1e7   : > { %1381 = vst [vmem:[%s259_s10] sm:$0xff] %v1380_v31 }
 0x1e8   : > { %1842 = shalt.err (!%p1839_p0)
}
 0x1e9   : > { %s1843_s20 = scalar_lea.hbm %s2247_s27, 128  ;;  %s1847_s4 = scalar_lea.hbm %s2293_s3, 256 }
 0x1ea   : > { %p1844_p5 = scmp.ne.s32.totalorder %s2247_s27, %s1843_s20  ;;  %p1848_p6 = scmp.lt.s32.totalorder %s2247_s27, %s2293_s3 }
 0x1eb   : > { %p1849_p9 = scmp.lt.s32.totalorder %s1847_s4, %s1843_s20 }
 0x1ec   : > { %p1845_p7 = pnand %p1844_p5, %p2036_p3 }
 0x1ed   : > { %p1850_p10 = por %p1849_p9, %p1848_p6 }
 0x1ee   : > { %p1846_p2 = pneg %p1845_p7 }
 0x1f0   : > { %p1851_p1 = pnand %p1850_p10, %p1846_p2 }
 0x1f2   : > { %1854 = shalt.err (!%p1851_p1)
}
 0x1f3   : > { %1663 = dma.vmem_to_hbm [thread:$0]  (%p2036_p3), %s1398_s11, 128, %s2247_s27, %s1383_s1  }
 0x1f4 PF: > { %s1409_s9 = sand.u32 1, %s1897_s12   ;;  %p2309_p4 = scmp.ne.s32.totalorder %s2298_s21, 0 }
 0x1f5   : > { %p2310_p8 = scmp.ge.s32.totalorder %s1917_s17, 2  ;;  %s1410_s28 = scalar_lea.sflag [#allocation4], %s1409_s9 }
 0x1f7   : > { %p1677_p11 = pnand %p2310_p8, %p2309_p4 }
 0x1f9   : > { %p1678_p12 = pneg %p1677_p11 }
 0x1fb   : > { %1892 = dma.done.wait (%p1678_p12), %s1410_s28, 128  }
 0x1fc   : > { %1894 = vsyncadd (%p1678_p12), %s1410_s28, 4294967168  ;;  %s22_s17 = sadd.s32 1, %s1917_s17   ;;  %s2311_s12 = smov %s1901_s13 }
 0x1fd   : > { %p19_p13 = scmp.ge.s32.totalorder %s22_s17, 4   ;;  %s2312_s13 = smov %s1905_s14 }
 0x1fe   : > { %s2313_s14 = smov %s2042_s7  ;;  %s2314_s15 = smov %s1913_s16 }
 0x1ff   : > { %s2315_s16 = smov %s2317_s26  ;;  %21 = sbr.rel (!%p19_p13) target bundleno = 11 (0xb), region = 94 }
 0x204   :  { %1415 = vsyncpa [#allocation3], 1 }
 0x205   :  { %1417 = vsyncpa [#allocation3 + $0x1], 1 }
 0x206   :  { %1418 = vsyncpa [#allocation6], 1 }
 0x207   :  { %1420 = vsyncpa [#allocation6 + $0x1], 1 }
 0x208   :  { %1421 = vsyncpa [#allocation4], 1 }
 0x209   :  { %1423 = vsyncpa [#allocation4 + $0x1], 1 }

</bundles_post_ra>
